<compile_context>
chip_gen: v7x
topology: tpu7x:2x2x1
jax: 0.10.0
libtpu: 0.0.40
codegen_flags: <defaults>
</compile_context>

<pallas_src>
import functools

import jax
import jax.numpy as jnp
from jax import lax
from jax.experimental import pallas as pl
from jax.experimental.pallas import tpu as pltpu


def _cdiv(a: int, b: int) -> int:
    return -(-a // b)


def _round_up(x: int, m: int) -> int:
    return ((x + m - 1) // m) * m


def _tile_and_vmem(np_rows, dp, in_itemsize, tile_rows):
    """Pick the packed-row tile size and an explicit scoped-VMEM limit.

    The budget is derived from the chip's actual VMEM capacity so one choice is
    safe on every generation (v7x: 64 MiB/core; v5e/v6e: 128 MiB).
    """
    try:
        cap = int(getattr(pltpu.get_tpu_info(), "vmem_capacity_bytes",
                          64 * 1024 * 1024))
    except Exception:  # no TPU visible at trace time / interpret mode
        cap = 64 * 1024 * 1024
    # Working set: 2 input streams x 2 pipeline buffers (native dtype) plus the
    # f32 temporaries one step materialises (2 upcasts + 3 products + loss).
    budget = min(cap // 2, 40 * 1024 * 1024)           # ~32 MiB v7x, 40 MiB v5e/v6e
    vmem_limit = int(min(cap - 8 * 1024 * 1024, budget + 12 * 1024 * 1024))

    if tile_rows is not None:
        tn = max(1, int(tile_rows))
        tn = tn if tn >= np_rows else max(8, (tn // 8) * 8)
    else:
        per_row = 2 * 2 * dp * in_itemsize + 6 * dp * 4
        tn = max(8, (budget // per_row) // 8 * 8)
        # Keep >= 2 tiles so the v7x dual-core split has work for both cores and
        # the DMA/compute pipeline has something to overlap.
        tn = min(tn, max(8, _round_up(_cdiv(np_rows, 2), 8)))
    if tn >= np_rows:
        tn = np_rows                                    # single full-extent block
    return int(tn), vmem_limit


def _cosine_embedding_loss_kernel(flag_ref, x1_ref, x2_ref, rsel_ref,
                                  out_ref, acc_ref, *,
                                  margin, epsilon, rows_true, tn,
                                  steps_per_slice, total_tiles, needs_mask):
    c = pl.program_id(0)            # slice (one per TensorCore on v7x)
    i = pl.program_id(1)            # batch tile within the slice
    g = c * steps_per_slice + i     # global (unclamped) tile index

    @pl.when(i == 0)
    def _init():
        acc_ref[...] = jnp.zeros_like(acc_ref)

    # Tiles stream in their native dtype; upcast once in VMEM.
    x1 = x1_ref[...].astype(jnp.float32)                # (tn, Dp)
    x2 = x2_ref[...].astype(jnp.float32)                # (tn, Dp)
    rsel = rsel_ref[...]                                # (Dp, k) 0/1 selector

    # Per-row (segmented) reductions on the MXU instead of jnp.sum(axis=-1):
    # the cross-lane XLU tree reduce was the binding slot; the MXU sits idle.
    dot = jnp.dot(x1 * x2, rsel, preferred_element_type=jnp.float32)   # (tn, k)
    s1 = jnp.dot(x1 * x1, rsel, preferred_element_type=jnp.float32)
    s2 = jnp.dot(x2 * x2, rsel, preferred_element_type=jnp.float32)

    # ||x1||*||x2|| == sqrt(s1*s2): one sqrt.  approx=False is the full-precision
    # divide path (approx=True would be the EUP vrcp), kept for reference parity.
    denom = jnp.sqrt(s1 * s2) + jnp.float32(epsilon)
    sim = dot * pl.reciprocal(denom, approx=False)

    # Global torch.equal(target, ones) flag (prefetched SMEM scalar) selects one
    # branch for the WHOLE batch, exactly like the reference.
    all_ones = flag_ref[0] == 1
    loss = jnp.where(all_ones,
                     jnp.float32(1.0) - sim,
                     jnp.maximum(jnp.zeros_like(sim), sim - jnp.float32(margin)))

    def _accumulate(vals):
        acc_ref[...] += jnp.sum(vals, keepdims=True)

    if needs_mask:
        # Only the final tile (and the overshoot tile of slice 1 when the tile
        # count is odd) can hold rows past the true batch; every other step skips
        # the masking work entirely.
        @pl.when(g < total_tiles - 1)
        def _full_tile():
            _accumulate(loss)

        @pl.when(g >= total_tiles - 1)
        def _edge_tile():
            rows = g * tn + lax.broadcasted_iota(jnp.int32, loss.shape, 0)
            _accumulate(jnp.where(rows < rows_true, loss, jnp.float32(0.0)))
    else:
        _accumulate(loss)

    @pl.when(i == steps_per_slice - 1)
    def _finish():
        # Per-slice partial sum, broadcast over the (8, 128) output block so the
        # store stays lane-dense; the wrapper sums the slices and divides by N.
        out_ref[...] = jnp.broadcast_to(acc_ref[...], out_ref.shape)


def cosine_embedding_loss(x1, x2, target, margin=0.0, epsilon=1e-12,
                          tile_rows=None):
    """x1, x2: (N, D) float arrays (any float dtype); target: (N,).

    Returns the scalar float32 loss of the reference module.  `tile_rows`
    (optional) is the tile size in *packed* rows, mainly for tests.
    """
    n, d = x1.shape
    assert x2.shape == (n, d), (x1.shape, x2.shape)

    # torch.equal(target, ones): one global scalar flag.
    flag = jnp.all(target == 1).astype(jnp.int32).reshape(1)

    # Lane packing: fold k = 128 // D rows into one 128-wide lane row (free
    # row-major reshape).  Per-row sums stay separable because the MXU selector
    # below is block-diagonal.
    k = 1
    if d < 128 and 128 % d == 0 and n % (128 // d) == 0:
        k = 128 // d
    np_rows, dp = n // k, d * k
    x1p = x1.reshape(np_rows, dp)
    x2p = x2.reshape(np_rows, dp)

    itemsize = jnp.dtype(x1.dtype).itemsize
    tn, vmem_limit = _tile_and_vmem(np_rows, dp, itemsize, tile_rows)

    total_tiles = _cdiv(np_rows, tn)
    num_slices = 2 if total_tiles >= 2 else 1      # v7x: one slice per TensorCore
    steps_per_slice = _cdiv(total_tiles, num_slices)
    needs_mask = (num_slices * steps_per_slice * tn) != np_rows

    # (Dp, k) block-diagonal 0/1 selection matrix: column j sums lanes
    # [j*D, (j+1)*D), i.e. the j-th packed sub-row's original-row reduction.
    rsel = (lax.broadcasted_iota(jnp.int32, (dp, k), 0) // d
            == lax.broadcasted_iota(jnp.int32, (dp, k), 1)).astype(jnp.float32)

    kernel = functools.partial(
        _cosine_embedding_loss_kernel,
        margin=float(margin), epsilon=float(epsilon), rows_true=int(np_rows),
        tn=int(tn), steps_per_slice=int(steps_per_slice),
        total_tiles=int(total_tiles), needs_mask=bool(needs_mask))

    last_tile = total_tiles - 1

    def x_map(c, i, _flag):
        # Clamp so the overshoot step of an odd tile count re-reads the last valid
        # tile instead of DMA-ing past the array; its rows are masked in-kernel.
        return (jnp.minimum(c * steps_per_slice + i, last_tile), 0)

    out = pl.pallas_call(
        kernel,
        out_shape=jax.ShapeDtypeStruct((num_slices * 8, 128), jnp.float32),
        grid_spec=pltpu.PrefetchScalarGridSpec(
            num_scalar_prefetch=1,
            grid=(num_slices, steps_per_slice),
            in_specs=[
                pl.BlockSpec((tn, dp), x_map),
                pl.BlockSpec((tn, dp), x_map),
                pl.BlockSpec((dp, k), lambda c, i, _flag: (0, 0)),
            ],
            out_specs=pl.BlockSpec((8, 128), lambda c, i, _flag: (c, 0)),
            scratch_shapes=[pltpu.VMEM((1, 1), jnp.float32)],
        ),
        compiler_params=pltpu.CompilerParams(
            dimension_semantics=("parallel", "arbitrary"),
            vmem_limit_bytes=int(vmem_limit)),
        cost_estimate=pl.CostEstimate(
            flops=int(6 * n * d + 12 * n),
            transcendentals=int(2 * n),
            bytes_accessed=int(2 * n * d * itemsize)),
    )(flag, x1p, x2p, rsel)

    # Per-slice partial sums live at rows 0, 8, ... of the output slab.
    return jnp.sum(out[0::8, 0]) / jnp.float32(n)


def _reference(x1, x2, target, margin=0.0, epsilon=1e-12):
    x1 = x1.astype(jnp.float32)
    x2 = x2.astype(jnp.float32)
    sim = jnp.sum(x1 * x2, axis=-1) / (
        jnp.linalg.norm(x1, axis=-1) * jnp.linalg.norm(x2, axis=-1) + epsilon)
    return jnp.mean(jnp.where(jnp.all(target == 1),
                              1.0 - sim,
                              jnp.maximum(0.0, sim - margin)))


if __name__ == "__main__":
    key = jax.random.PRNGKey(0)
    ks = jax.random.split(key, 8)

    # Tolerances leave room for the MXU's reduced-precision f32 passes in the row
    # reductions; any semantic bug (mask / mean / branch) would be >> 1e-2.
    TOL = dict(atol=1e-4, rtol=1e-3)

    # Case 1: mixed +/-1 targets (negative branch), D=32 -> 4-way lane packing,
    # single tile, single slice.
    N, D = 8, 32
    x1 = jax.random.normal(ks[0], (N, D), dtype=jnp.float32)
    x2 = jax.random.normal(ks[1], (N, D), dtype=jnp.float32)
    tgt = jnp.where(jax.random.bernoulli(ks[2], 0.5, (N,)), 1.0, -1.0).astype(jnp.float32)
    got = cosine_embedding_loss(x1, x2, tgt, margin=0.0)
    jax.block_until_ready(got)
    want = _reference(x1, x2, tgt, margin=0.0)
    assert jnp.allclose(got, want, **TOL), (got, want)

    # Case 2: all-ones target (positive branch), forced small tile -> two slices
    # (one per v7x core) with one tile each, no remainder.
    N, D = 64, 32
    x1 = jax.random.normal(ks[3], (N, D), dtype=jnp.float32)
    x2 = jax.random.normal(ks[4], (N, D), dtype=jnp.float32)
    tgt = jnp.ones((N,), dtype=jnp.float32)
    got = cosine_embedding_loss(x1, x2, tgt, margin=0.1, tile_rows=8)
    jax.block_until_ready(got)
    want = _reference(x1, x2, tgt, margin=0.1)
    assert jnp.allclose(got, want, **TOL), (got, want)

    # Case 3: D=128 (no packing), odd tile count -> exercises the remainder mask,
    # the clamped overshoot tile of slice 1, and multi-step accumulation.
    N, D = 40, 128
    x1 = jax.random.normal(ks[5], (N, D), dtype=jnp.float32)
    x2 = jax.random.normal(ks[6], (N, D), dtype=jnp.float32)
    tgt = jnp.where(jax.random.bernoulli(ks[7], 0.5, (N,)), 1.0, -1.0).astype(jnp.float32)
    got = cosine_embedding_loss(x1, x2, tgt, margin=0.2, tile_rows=16)
    jax.block_until_ready(got)
    want = _reference(x1, x2, tgt, margin=0.2)
    assert jnp.allclose(got, want, **TOL), (got, want)

    # Case 4: bf16 inputs stream at half the bytes; upcast happens in-kernel.
    N, D = 32, 64
    x1 = jax.random.normal(ks[0], (N, D), dtype=jnp.bfloat16)
    x2 = jax.random.normal(ks[1], (N, D), dtype=jnp.bfloat16)
    tgt = jnp.ones((N,), dtype=jnp.float32)
    got = cosine_embedding_loss(x1, x2, tgt, margin=0.0)
    jax.block_until_ready(got)
    want = _reference(x1, x2, tgt, margin=0.0)
    assert jnp.allclose(got, want, **TOL), (got, want)

    print("KERNEL_OK")
</pallas_src>

<mosaic_0001>
module attributes {stable_mosaic.version = 11 : i64} {
  func.func @_cosine_embedding_loss_kernel(%arg0: i32, %arg1: i32, %arg2: memref<1xi32, #tpu.memory_space<smem>>, %arg3: memref<2x128xf32, #tpu.memory_space<vmem>>, %arg4: memref<2x128xf32, #tpu.memory_space<vmem>>, %arg5: memref<128x4xf32, #tpu.memory_space<vmem>>, %arg6: memref<8x128xf32, #tpu.memory_space<vmem>>, %arg7: memref<1x1xf32, #tpu.memory_space<vmem>>) attributes {dimension_semantics = [#tpu.dimension_semantics<parallel>, #tpu.dimension_semantics<arbitrary>], iteration_bounds = array<i64: 1, 1>, scalar_prefetch = 1 : i64, scratch_operands = 1 : i64, tpu.core_type = #tpu.core_type<tc>, window_params = [{transform_indices = @transform_0, window_bounds = array<i64: 2, 128>}, {transform_indices = @transform_1, window_bounds = array<i64: 2, 128>}, {pipeline_mode = #tpu.pipeline_mode<synchronous>, transform_indices = @transform_2, window_bounds = array<i64: 128, 4>}, {transform_indices = @transform_3, window_bounds = array<i64: 8, 128>}]} {
    %c0_i32 = arith.constant 0 : i32
    %0 = arith.cmpi eq, %arg1, %c0_i32 : i32
    %1 = arith.extui %0 : i1 to i32
    %c0_i32_0 = arith.constant 0 : i32
    %2 = arith.cmpi ne, %1, %c0_i32_0 : i32
    scf.if %2 {
      %cst_20 = arith.constant 0.000000e+00 : f32
      %38 = vector.broadcast %cst_20 : f32 to vector<1x1xf32>
      %c0_21 = arith.constant 0 : index
      %c0_22 = arith.constant 0 : index
      %39 = vector.load %arg7[%c0_21, %c0_22] : memref<1x1xf32, #tpu.memory_space<vmem>>, vector<1x1xf32>
      tpu.vector_store %arg7[%c0_21, %c0_22], %38 {strides = array<i32>} : memref<1x1xf32, #tpu.memory_space<vmem>>, vector<1x1xf32>,
    } else {
    }
    %c0 = arith.constant 0 : index
    %c0_1 = arith.constant 0 : index
    %3 = vector.load %arg3[%c0, %c0_1] : memref<2x128xf32, #tpu.memory_space<vmem>>, vector<2x128xf32>
    %c0_2 = arith.constant 0 : index
    %c0_3 = arith.constant 0 : index
    %4 = vector.load %arg4[%c0_2, %c0_3] : memref<2x128xf32, #tpu.memory_space<vmem>>, vector<2x128xf32>
    %c0_4 = arith.constant 0 : index
    %c0_5 = arith.constant 0 : index
    %5 = vector.load %arg5[%c0_4, %c0_5] : memref<128x4xf32, #tpu.memory_space<vmem>>, vector<128x4xf32>
    %6 = arith.mulf %3, %4 : vector<2x128xf32>
    %cst = arith.constant dense<0.000000e+00> : vector<2x4xf32>
    %7 = tpu.matmul %6, %5, %cst {dimension_numbers = #tpu.dot_dimension_numbers<[1], [0], [0], [1], [0, 0, 1, 1], [], []>} : vector<2x128xf32>, vector<128x4xf32>, vector<2x4xf32> -> vector<2x4xf32>
    %8 = arith.mulf %3, %3 : vector<2x128xf32>
    %cst_6 = arith.constant dense<0.000000e+00> : vector<2x4xf32>
    %9 = tpu.matmul %8, %5, %cst_6 {dimension_numbers = #tpu.dot_dimension_numbers<[1], [0], [0], [1], [0, 0, 1, 1], [], []>} : vector<2x128xf32>, vector<128x4xf32>, vector<2x4xf32> -> vector<2x4xf32>
    %10 = arith.mulf %4, %4 : vector<2x128xf32>
    %cst_7 = arith.constant dense<0.000000e+00> : vector<2x4xf32>
    %11 = tpu.matmul %10, %5, %cst_7 {dimension_numbers = #tpu.dot_dimension_numbers<[1], [0], [0], [1], [0, 0, 1, 1], [], []>} : vector<2x128xf32>, vector<128x4xf32>, vector<2x4xf32> -> vector<2x4xf32>
    %12 = arith.mulf %9, %11 : vector<2x4xf32>
    %13 = math.sqrt %12 : vector<2x4xf32>
    %cst_8 = arith.constant 9.99999996E-13 : f32
    %14 = vector.broadcast %cst_8 : f32 to vector<2x4xf32>
    %15 = arith.addf %13, %14 : vector<2x4xf32>
    %16 = tpu.reciprocal %15 : vector<2x4xf32> -> vector<2x4xf32>
    %17 = arith.mulf %7, %16 : vector<2x4xf32>
    %c0_9 = arith.constant 0 : index
    %18 = memref.load %arg2[%c0_9] : memref<1xi32, #tpu.memory_space<smem>>
    %c1_i32 = arith.constant 1 : i32
    %19 = arith.cmpi eq, %18, %c1_i32 : i32
    %cst_10 = arith.constant 1.000000e+00 : f32
    %20 = vector.broadcast %cst_10 : f32 to vector<2x4xf32>
    %21 = arith.subf %20, %17 : vector<2x4xf32>
    %cst_11 = arith.constant 0.000000e+00 : f32
    %22 = vector.broadcast %cst_11 : f32 to vector<2x4xf32>
    %cst_12 = arith.constant 0.000000e+00 : f32
    %23 = vector.broadcast %cst_12 : f32 to vector<2x4xf32>
    %24 = arith.subf %17, %23 : vector<2x4xf32>
    %25 = arith.maximumf %22, %24 : vector<2x4xf32>
    %26 = arith.select %19, %21, %25 : vector<2x4xf32>
    %c0_13 = arith.constant 0 : index
    %c0_14 = arith.constant 0 : index
    %27 = vector.load %arg7[%c0_13, %c0_14] : memref<1x1xf32, #tpu.memory_space<vmem>>, vector<1x1xf32>
    %28 = vector.shape_cast %26 : vector<2x4xf32> to vector<1x2x4xf32>
    %cst_15 = arith.constant dense<0.000000e+00> : vector<1xf32>
    %29 = vector.multi_reduction <add>, %28, %cst_15 [1, 2] : vector<1x2x4xf32> to vector<1xf32>
    %30 = vector.shape_cast %29 : vector<1xf32> to vector<1x1x1xf32>
    %31 = vector.extract %30[0, 0, 0] : f32 from vector<1x1x1xf32>
    %32 = vector.broadcast %31 : f32 to vector<1x1xf32>
    %33 = arith.addf %27, %32 : vector<1x1xf32>
    %c0_16 = arith.constant 0 : index
    %c0_17 = arith.constant 0 : index
    %34 = vector.load %arg7[%c0_16, %c0_17] : memref<1x1xf32, #tpu.memory_space<vmem>>, vector<1x1xf32>
    tpu.vector_store %arg7[%c0_16, %c0_17], %33 {strides = array<i32>} : memref<1x1xf32, #tpu.memory_space<vmem>>, vector<1x1xf32>,
    %c0_i32_18 = arith.constant 0 : i32
    %35 = arith.cmpi eq, %arg1, %c0_i32_18 : i32
    %36 = arith.extui %35 : i1 to i32
    %c0_i32_19 = arith.constant 0 : i32
    %37 = arith.cmpi ne, %36, %c0_i32_19 : i32
    scf.if %37 {
      %c0_20 = arith.constant 0 : index
      %c0_21 = arith.constant 0 : index
      %38 = vector.load %arg7[%c0_20, %c0_21] : memref<1x1xf32, #tpu.memory_space<vmem>>, vector<1x1xf32>
      %39 = vector.shape_cast %38 : vector<1x1xf32> to vector<1x1xf32>
      %40 = vector.broadcast %39 : vector<1x1xf32> to vector<8x128xf32>
      %c0_22 = arith.constant 0 : index
      %c0_23 = arith.constant 0 : index
      %41 = vector.load %arg6[%c0_22, %c0_23] : memref<8x128xf32, #tpu.memory_space<vmem>>, vector<8x128xf32>
      tpu.vector_store %arg6[%c0_22, %c0_23], %40 {strides = array<i32>} : memref<8x128xf32, #tpu.memory_space<vmem>>, vector<8x128xf32>,
    } else {
    }
    return
  }
  func.func @transform_0(%arg0: i32, %arg1: i32, %arg2: memref<1xi32, #tpu.memory_space<smem>>) -> (i32, i32) {
    %c1_i32 = arith.constant 1 : i32
    %0 = arith.muli %arg0, %c1_i32 : i32
    %1 = arith.addi %0, %arg1 : i32
    %c0_i32 = arith.constant 0 : i32
    %2 = arith.minsi %1, %c0_i32 : i32
    %c0_i32_0 = arith.constant 0 : i32
    %c0_i32_1 = arith.constant 0 : i32
    return %2, %c0_i32_0 : i32, i32
  }
  func.func @transform_1(%arg0: i32, %arg1: i32, %arg2: memref<1xi32, #tpu.memory_space<smem>>) -> (i32, i32) {
    %c1_i32 = arith.constant 1 : i32
    %0 = arith.muli %arg0, %c1_i32 : i32
    %1 = arith.addi %0, %arg1 : i32
    %c0_i32 = arith.constant 0 : i32
    %2 = arith.minsi %1, %c0_i32 : i32
    %c0_i32_0 = arith.constant 0 : i32
    %c0_i32_1 = arith.constant 0 : i32
    return %2, %c0_i32_0 : i32, i32
  }
  func.func @transform_2(%arg0: i32, %arg1: i32, %arg2: memref<1xi32, #tpu.memory_space<smem>>) -> (i32, i32) {
    %c0_i32 = arith.constant 0 : i32
    %c0_i32_0 = arith.constant 0 : i32
    %c0_i32_1 = arith.constant 0 : i32
    return %c0_i32, %c0_i32_0 : i32, i32
  }
  func.func @transform_3(%arg0: i32, %arg1: i32, %arg2: memref<1xi32, #tpu.memory_space<smem>>) -> (i32, i32) {
    %c0_i32 = arith.constant 0 : i32
    %c0_i32_0 = arith.constant 0 : i32
    return %arg0, %c0_i32 : i32, i32
  }
}

</mosaic_0001>

<bundles_post_ra>
// kernel: tpu_custom_call.1
= control target key start
LH: loop header
LB: loop body
LE: loop exit
PB: predicated region body
PF: predicated region fallthrough
CT: control target
= control target key end

     0   :  { %vm75_vm0 = vcmask 0   ;;  %v648_v3 = vmov 0.0|0.0   ;;  %v649_v6 = vmov 0.0   ;;  %vm650_vm1 = vmmov 0   ;;  %s785_s0 = inlined_call_operand.<no memory space> [shape: s32[1], index: 0, kind: input, shape index: {}]   ;;  %s786_s1 = inlined_call_operand.vmem [shape: f32[2,128], index: 1, kind: input, shape index: {}]   ;;  %s787_s2 = inlined_call_operand.vmem [shape: f32[2,128], index: 2, kind: input, shape index: {}]   ;;  %s788_s3 = inlined_call_operand.vmem [shape: f32[128,4], index: 3, kind: input, shape index: {}]   ;;  %s789_s4 = inlined_call_operand.hbm [shape: f32[8,128], index: 4, kind: output, shape index: {}]  }
   0x1   :  { %v79_v0 = vld [vmem:[%s788_s3] sm:$0xff]  ;;  %v80_v1 = vld [vmem:[%s788_s3 + $0x8] sm:$0xff]  ;;  %v81_v2 = vld [vmem:[%s788_s3 + $0x10] sm:$0xff]  ;;  %540 = vmatprep.subr.bf16.mxu0 %v648_v3  ;;  %76 = vst.msk [vmem:[#allocation2] sm:$0x1] %vm75_vm0, %v649_v6  ;;  %564 = vmatprep.subr.bf16.mxu1 %v648_v3 }
   0x2   :  { %v688_v4 = vpack.c.bf16 %v80_v1, %v79_v0  ;;  %v82_v5 = vld [vmem:[%s788_s3 + $0x18] sm:$0xff]  ;;  %467 = vmatprep.mubr.msk.f32.mxu0 %vm650_vm1, %v649_v6  ;;  %502 = vmatprep.mubr.msk.f32.mxu1 %vm650_vm1, %v649_v6  ;;  %v83_v8 = vld [vmem:[%s788_s3 + $0x20] sm:$0xff]  ;;  %v84_v9 = vld [vmem:[%s788_s3 + $0x28] sm:$0xff] }
   0x3   :  { %v544_v7 = vpack.c.bf16 %v82_v5, %v81_v2 }
   0x4   :  { %542 = vmatpush3.bf16.msra.mxu0 %v688_v4  ;;  %566 = vmatpush3.bf16.msra.mxu1 %v688_v4 }
   0x5   :  { %543 = vmatprep.subr.bf16.mxu0 %v648_v3  ;;  %567 = vmatprep.subr.bf16.mxu1 %v648_v3 }
   0x6   :  { %10 = vsyncpa [#allocation6], 0  ;;  %v547_v10 = vpack.c.bf16 %v84_v9, %v83_v8  ;;  %v85_v11 = vld [vmem:[%s788_s3 + $0x30] sm:$0xff]  ;;  %v86_v12 = vld [vmem:[%s788_s3 + $0x38] sm:$0xff]  ;;  %p320_p0 = scmp.eq.s32.totalorder %s785_s0, 1  ;;  %vm328_vm5 = vcmask 25600  }
   0x7   :  { %v550_v13 = vpack.c.bf16 %v86_v12, %v85_v11  ;;  %v87_v14 = vld [vmem:[%s788_s3 + $0x40] sm:$0xff]  ;;  %v88_v15 = vld [vmem:[%s788_s3 + $0x48] sm:$0xff]  ;;  %v89_v17 = vld [vmem:[%s788_s3 + $0x50] sm:$0xff]  ;;  %v651_v51 = vmov 0   ;;  %s652_s25 = smov [#allocation5]  }
   0x8   :  { %545 = vmatpush3.bf16.msra.mxu0 %v544_v7  ;;  %569 = vmatpush3.bf16.msra.mxu1 %v544_v7  ;;  %v553_v16 = vpack.c.bf16 %v88_v15, %v87_v14  ;;  %v90_v18 = vld [vmem:[%s788_s3 + $0x58] sm:$0xff]  ;;  %v91_v20 = vld [vmem:[%s788_s3 + $0x60] sm:$0xff]  ;;  %v92_v21 = vld [vmem:[%s788_s3 + $0x68] sm:$0xff]  ;;  %s363_s26 = sshll.u32 %s652_s25, 4  ;;  %s364_s26 = int_to_ptr.vmem [resolvable:$true] %s363_s26 }
   0x9   :  { %546 = vmatprep.subr.bf16.mxu0 %v648_v3  ;;  %570 = vmatprep.subr.bf16.mxu1 %v648_v3  ;;  %v556_v19 = vpack.c.bf16 %v90_v18, %v89_v17  ;;  %v559_v22 = vpack.c.bf16 %v92_v21, %v91_v20  ;;  %v93_v23 = vld [vmem:[%s788_s3 + $0x70] sm:$0xff]  ;;  %v94_v24 = vld [vmem:[%s788_s3 + $0x78] sm:$0xff]  ;;  %v77_v26 = vld [vmem:[%s786_s1] sm:$0x3]  ;;  %s323_s3 = scalar_select %p320_p0, 1, 0 }
   0xa   :  { %v562_v25 = vpack.c.bf16 %v94_v24, %v93_v23  ;;  %v78_v27 = vld [vmem:[%s787_s2] sm:$0x3]  ;;  %v166_v29 = vmul.f32 %v77_v26, %v77_v26  ;;  %619 = vset.pattern.permute.xlu0 %v651_v51  ;;  %s624_s27 = scalar_lea.vmem %s364_s26, 128  ;;  %p629_p2 = scmp.lt.s32.totalorder %s364_s26, %s364_s26 }
   0xb   :  { %v95_v28 = vmul.f32 %v78_v27, %v77_v26  ;;  %v237_v30 = vmul.f32 %v78_v27, %v78_v27  ;;  %v324_v44 = vstv %s323_s3  ;;  %v327_v59 = vld [vmem:[#allocation2] sm:$0x1]  ;;  %p625_p1 = scmp.ne.s32.totalorder %s364_s26, %s624_s27  ;;  %p630_p3 = scmp.lt.s32.totalorder %s624_s27, %s624_s27 }
   0xc   :  { %548 = vmatpush3.bf16.msra.mxu0 %v547_v10  ;;  %572 = vmatpush3.bf16.msra.mxu1 %v547_v10  ;;  %vm325_vm4 = vcmp.eq.s32.totalorder %v324_v44, 1 }
   0xd   :  { %549 = vmatprep.subr.bf16.mxu0 %v648_v3  ;;  %573 = vmatprep.subr.bf16.mxu1 %v648_v3  ;;  %p631_p4 = por %p630_p3, %p629_p2 }
   0xf   :  { %p632_p5 = pnand %p631_p4, %p625_p1 }
  0x10   :  { %551 = vmatpush3.bf16.msra.mxu0 %v550_v13  ;;  %575 = vmatpush3.bf16.msra.mxu1 %v550_v13 }
  0x11   :  { %552 = vmatprep.subr.bf16.mxu0 %v648_v3  ;;  %576 = vmatprep.subr.bf16.mxu1 %v648_v3 }
  0x14   :  { %554 = vmatpush3.bf16.msra.mxu0 %v553_v16  ;;  %578 = vmatpush3.bf16.msra.mxu1 %v553_v16 }
  0x15   :  { %555 = vmatprep.subr.bf16.mxu0 %v648_v3  ;;  %579 = vmatprep.subr.bf16.mxu1 %v648_v3 }
  0x18   :  { %557 = vmatpush3.bf16.msra.mxu0 %v556_v19  ;;  %581 = vmatpush3.bf16.msra.mxu1 %v556_v19 }
  0x19   :  { %558 = vmatprep.subr.bf16.mxu0 %v648_v3  ;;  %582 = vmatprep.subr.bf16.mxu1 %v648_v3 }
  0x1c   :  { %560 = vmatpush3.bf16.msra.mxu0 %v559_v22  ;;  %584 = vmatpush3.bf16.msra.mxu1 %v559_v22 }
  0x1d   :  { %561 = vmatprep.subr.bf16.mxu0 %v648_v3  ;;  %585 = vmatprep.subr.bf16.mxu1 %v648_v3 }
  0x20   :  { %563 = vmatpush3.bf16.msra.mxu0 %v562_v25  ;;  %587 = vmatpush3.bf16.msra.mxu1 %v562_v25 }
  0x21   :  { %588 = vmatprep.subr.bf16.mxu0 %v648_v3 }
  0x23   :  { %468 = vmatmul.mubr.f32.vlgmr.msra.gmra.mrb[0].mxu0 %v95_v28  ;;  %503 = vmatmul.mubr.f32.vlgmr.msra.gmra.mrb[0].mxu1 %v166_v29 }
  0x24   :  { %590 = vmatpush3.bf16.msra.mxu0 %v688_v4  ;;  %537 = vmatprep.mubr.msk.f32.mxu0 %vm650_vm1, %v649_v6 }
  0x25   :  { %591 = vmatprep.subr.bf16.mxu0 %v648_v3 }
  0x28   :  { %593 = vmatpush3.bf16.msra.mxu0 %v544_v7 }
  0x29   :  { %594 = vmatprep.subr.bf16.mxu0 %v648_v3 }
  0x2c   :  { %596 = vmatpush3.bf16.msra.mxu0 %v547_v10 }
  0x2d   :  { %597 = vmatprep.subr.bf16.mxu0 %v648_v3 }
  0x30   :  { %599 = vmatpush3.bf16.msra.mxu0 %v550_v13 }
  0x31   :  { %600 = vmatprep.subr.bf16.mxu0 %v648_v3 }
  0x34   :  { %602 = vmatpush3.bf16.msra.mxu0 %v553_v16 }
  0x35   :  { %603 = vmatprep.subr.bf16.mxu0 %v648_v3 }
  0x38   :  { %605 = vmatpush3.bf16.msra.mxu0 %v556_v19 }
  0x39   :  { %606 = vmatprep.subr.bf16.mxu0 %v648_v3 }
  0x3c   :  { %608 = vmatpush3.bf16.msra.mxu0 %v559_v22 }
  0x3d   :  { %609 = vmatprep.subr.bf16.mxu0 %v648_v3 }
  0x40   :  { %611 = vmatpush3.bf16.msra.mxu0 %v562_v25 }
  0x43   :  { %538 = vmatmul.mubr.f32.vlgmr.msra.gmra.mrb[2].mxu0 %v237_v30 }
  0xf6   :  { %v162_v31 = vpop.f32.mrb[0].mxu0  ;;  %v233_v32 = vpop.f32.mrb[0].mxu1 }
  0xf7   :  { %v469_v33 = vpop.f32.mrb[1].mxu0  ;;  %v504_v34 = vpop.f32.mrb[1].mxu1 }
 0x116   :  { %v304_v35 = vpop.f32.mrb[2].mxu0 }
 0x117   :  { %v308_v36 = vmul.f32 %v304_v35, %v233_v32  ;;  %v539_v37 = vpop.f32.mrb[3].mxu0 }
 0x119   :  { %620 = vrsqrt.f32 %v308_v36  ;;  %vm311_vm2 = vcmp.eq.f32.partialorder %v308_v36, inf  ;;  %v314_v40 = vand.u32 2147483648, %v308_v36  ;;  %vm313_vm3 = vcmp.eq.f32.partialorder %v308_v36, 0.0 }
 0x123   :  { %v621_v38 = vpop.eup %620 }
 0x124   :  { %v310_v39 = vmul.f32 %v621_v38, %v308_v36 }
 0x126   :  { %v312_v41 = vsel %vm311_vm2, %v308_v36, %v310_v39 }
 0x127   :  { %v315_v42 = vsel %vm313_vm3, %v314_v40, %v312_v41 }
 0x128   :  { %v316_v43 = vadd.f32 1e-12, %v315_v42 }
 0x12a   :  { %622 = vrcp.f32 %v316_v43 }
 0x134   :  { %v623_v45 = vpop.eup %622 }
 0x135   :  { %v318_v46 = vmul.f32 %v623_v45, %v162_v31 }
 0x137   :  { %v321_v47 = vsub.f32 1.0, %v318_v46  ;;  %v322_v48 = vmax.f32 %v318_v46, 0.0 }
 0x139   :  { %v326_v49 = vsel %vm325_vm4, %v321_v47, %v322_v48 }
 0x13a   :  { %v329_v50 = vsel %vm328_vm5, %v326_v49, 0.0 }
 0x13b   :  { %330 = vadd.xlane.f32.xlu0 %v329_v50 }
 0x1c8   :  { %v331_v52 = vpop.xlane.xlu0 %330 }
 0x1c9   :  { %v332_v53 = vrot.slane %v331_v52, 4 }
 0x1cb   :  { %v333_v54 = vadd.f32 %v332_v53, %v331_v52 }
 0x1cd   :  { %v334_v55 = vrot.slane %v333_v54, 2 }
 0x1cf   :  { %v335_v56 = vadd.f32 %v334_v55, %v333_v54 }
 0x1d1   :  { %v336_v57 = vrot.slane %v335_v56, 1 }
 0x1d3   :  { %v337_v58 = vadd.f32 %v336_v57, %v335_v56 }
 0x1d5   :  { %612 = vpush %v337_v58 }
 0x206   :  { %s613_s0 = spop %612 }
 0x207   :  { %v339_v60 = vstv %s613_s0 }
 0x208   :  { %v340_v61 = vadd.f32 %v339_v60, %v327_v59 }
 0x20a   :  { %342 = vst.msk [vmem:[#allocation2] sm:$0x1] %vm75_vm0, %v340_v61 }
 0x211   :  { %v383_v62 = vld [vmem:[#allocation2] ss:$0 sm:$0xff] }
 0x212   :  { %353 = vperm.xlu0 %619, %v383_v62  }
 0x291   :  { %v354_v63 = vpop.permute.xlu0 %353 }
 0x292   :  { %356 = vst [vmem:[#allocation5] sm:$0xff] %v354_v63 }
 0x293   :  { %635 = shalt.err (!%p632_p5)
}
 0x294   :  { %s636_s30 = scalar_lea.hbm %s789_s4, 128 }
 0x295   :  { %p637_p6 = scmp.ne.s32.totalorder %s789_s4, %s636_s30  ;;  %p640_p7 = scmp.lt.u32.totalorder %s636_s30, %s789_s4 }
 0x297   :  { %p642_p8 = pnand %p640_p7, %p637_p6 }
 0x299   :  { %645 = shalt.err (!%p642_p8)
}
 0x29a   :  { %366 = dma.vmem_to_hbm [thread:$0]  %s364_s26, 128, %s789_s4, [#allocation6]  }
 0x29b   :  { %646 = dma.done.wait [#allocation6], 128  }
 0x29c   :  { %647 = vsyncadd [#allocation6], 4294967168 }
 0x29d   :  { %370 = vsyncpa [#allocation6], 1 }

</bundles_post_ra>
